<compile_context>
chip_gen: v7x
topology: tpu7x:2x2x1
jax: 0.10.0
libtpu: 0.0.40
codegen_flags: <defaults>
</compile_context>

<pallas_src>
import functools

import jax
import jax.numpy as jnp
import numpy as np
from jax.experimental import pallas as pl
from jax.experimental.pallas import tpu as pltpu


def _conv1d_head_kernel(*refs, eps: float, has_fa: bool):
    """Conv1d(K) -> GroupNorm -> Mish -> Conv1d(K) [+ first_action], one shot.

    refs (all whole-array VMEM, no grid):
      x_ref:    (B, C_in, L)        input, PyTorch NCL layout
      w1_ref:   (K*C_in, C1)        conv1 weights, taps flattened (tap-major)
      a_ref:    (C1, C1)            block-diag group-average matrix (1/cpg in-group)
      w2_ref:   (K*C1, C_out)       conv2 weights, taps flattened (tap-major)
      vecs_ref: (4, max(C1,C_out))  rows: b1, gamma, beta, b2
      fa_ref:   (B, C_out, L)       only present when has_fa
      o_ref:    (B, C_out, L)       output in PyTorch (channel, length) layout
    """
    if has_fa:
        x_ref, w1_ref, a_ref, w2_ref, vecs_ref, fa_ref, o_ref = refs
    else:
        x_ref, w1_ref, a_ref, w2_ref, vecs_ref, o_ref = refs
        fa_ref = None

    B, c_in, L = x_ref.shape
    C1 = w1_ref.shape[1]
    K = w1_ref.shape[0] // c_in
    c_out = w2_ref.shape[1]
    pad = K // 2
    n = B * L

    b1 = vecs_ref[0:1, 0:C1]
    gamma = vecs_ref[1:2, 0:C1]
    beta = vecs_ref[2:3, 0:C1]
    b2 = vecs_ref[3:4, 0:c_out]

    # Sequence position of every row of the merged (B*L, .) slab.
    pos = jax.lax.broadcasted_iota(jnp.int32, (n, 1), 0) % L

    def im2col(z):
        """Lane-concat of the K shifted copies of z; rows are (b, l) pairs.

        Shifted windows stay in vregs (static roll == slice+concat, no VMEM
        scratch); rows that would cross a sequence boundary (conv zero padding
        and batch-to-batch wraparound in the merged slab) are masked to zero.
        """
        cols = []
        for k in range(K):
            s = pad - k                       # tap k reads z[b, l + k - pad]
            if s == 0:
                cols.append(z)
            else:
                r = jnp.roll(z, s, axis=0)
                bad = (pos < s) if s > 0 else (pos >= L + s)
                cols.append(jnp.where(bad, 0.0, r))
        return jnp.concatenate(cols, axis=-1)  # (B*L, K * z.shape[-1])

    # ---- Conv1d #1: NCL -> (B*L, C_in) once, then ONE MXU matmul for all taps.
    x = jnp.concatenate([x_ref[b].T for b in range(B)], axis=0)      # (B*L, C_in)
    h = jnp.dot(im2col(x), w1_ref[...],
                preferred_element_type=jnp.float32) + b1             # (B*L, C1)

    # ---- GroupNorm: per-(batch, group) stats via one stacked matmul against A.
    h3 = h.reshape(B, L, C1)
    s1 = jnp.sum(h3, axis=1)                                         # (B, C1)
    s2 = jnp.sum(h3 * h3, axis=1)                                    # (B, C1)
    stats = jnp.concatenate([s1, s2], axis=0)                        # (2B, C1)
    stats = jnp.dot(stats, a_ref[...],
                    preferred_element_type=jnp.float32) * (1.0 / L)
    mean = stats[0:B]                                                # (B, C1)
    var = stats[B:2 * B] - mean * mean      # single-pass variance (f32, small L)
    scale = jax.lax.rsqrt(var + eps) * gamma                         # (B, C1)
    shift = beta - mean * scale                                      # (B, C1)
    h = (h3 * scale[:, None, :] + shift[:, None, :]).reshape(n, C1)

    # ---- Mish with a single transcendental:
    #      x * tanh(softplus(x)) == x * t*(t+2) / (t*(t+2) + 2),  t = e^x
    t = jnp.exp(jnp.minimum(h, 20.0))
    num = t * (t + 2.0)
    h = h * (num / (num + 2.0))

    # ---- Conv1d #2: K shifted windows lane-concatenated -> one K*C1-deep matmul.
    y = jnp.dot(im2col(h), w2_ref[...],
                preferred_element_type=jnp.float32) + b2             # (B*L, C_out)
    y = y.reshape(B, L, c_out)

    # ---- To PyTorch (B, C_out, L) layout; fused first_action add.
    for b in range(B):                  # tiny static loop: one transpose + store
        ob = y[b].T                                                  # (C_out, L)
        if has_fa:
            ob = ob + fa_ref[b]
        o_ref[b] = ob.astype(o_ref.dtype)


def prepare_conv1d_head_params(params, n_groups):
    """One-time weight prep: tap-flattened conv weights, GroupNorm group-average
    matrix, and the four per-channel vectors packed into a single (4, C) array."""
    w1 = np.asarray(params["w1"], np.float32)     # (C1, C_in, K)  torch layout
    w2 = np.asarray(params["w2"], np.float32)     # (C_out, C1, K)
    C1, c_in, K = w1.shape
    c_out = w2.shape[0]
    cpg = C1 // n_groups

    gid = np.arange(C1) // cpg
    A = (gid[:, None] == gid[None, :]).astype(np.float32) / float(cpg)

    VC = max(C1, c_out)
    vecs = np.zeros((4, VC), np.float32)
    vecs[0, :C1] = np.asarray(params["b1"], np.float32)
    vecs[1, :C1] = np.asarray(params["gamma"], np.float32)
    vecs[2, :C1] = np.asarray(params["beta"], np.float32)
    vecs[3, :c_out] = np.asarray(params["b2"], np.float32)

    return {
        # w[o, c, k] -> W[k*C + c, o]  (matches the kernel's im2col tap order)
        "W1": jnp.asarray(np.transpose(w1, (2, 1, 0)).reshape(K * c_in, C1)),
        "W2": jnp.asarray(np.transpose(w2, (2, 1, 0)).reshape(K * C1, c_out)),
        "A": jnp.asarray(A),
        "vecs": jnp.asarray(vecs),
    }


def conv1d_head_forward(x_ncl, prep, first_action=None, eps=1e-5):
    """x_ncl: (B, C_in, L), like the PyTorch Conv1d input.  Returns (B, C_out*L)."""
    B, c_in, L = x_ncl.shape
    W1, W2, A, vecs = prep["W1"], prep["W2"], prep["A"], prep["vecs"]
    c_out = W2.shape[1]
    has_fa = first_action is not None

    inputs = [x_ncl.astype(jnp.float32), W1, A, W2, vecs]
    if has_fa:
        # (B, C_out*L) -> (B, C_out, L): contiguous, free reshape.
        inputs.append(first_action.reshape(B, c_out, L).astype(jnp.float32))

    vmem = pl.BlockSpec(memory_space=pltpu.MemorySpace.VMEM)
    kernel = functools.partial(_conv1d_head_kernel, eps=eps, has_fa=has_fa)

    # Single grid-less invocation: at these shapes the kernel is latency-bound
    # (MXU/HBM/VMEM all <1% utilized), so extra grid steps are pure per-step
    # overhead on single-TC v5e/v6e.  For large B, add a batch-blocked grid with
    # dimension_semantics=(pltpu.CORE_PARALLEL,) to actually reach v7x's 2nd TC.
    out = pl.pallas_call(
        kernel,
        out_shape=jax.ShapeDtypeStruct((B, c_out, L), jnp.float32),
        in_specs=[vmem] * len(inputs),
        out_specs=vmem,
    )(*inputs)

    # (B, C_out, L) contiguous -> free reshape, matches PyTorch `.view(len(x), -1)`.
    return out.reshape(B, c_out * L)


def _reference_forward(x_ncl, params, n_groups, first_action=None, eps=1e-5):
    """Pure-JAX reference (same math as the PyTorch module, NCL layout)."""
    w1, b1, gamma, beta, w2, b2 = (params[k] for k in
                                   ("w1", "b1", "gamma", "beta", "w2", "b2"))

    def conv1d(x, w, b, pad):
        return jax.lax.conv_general_dilated(
            x, w, window_strides=(1,), padding=[(pad, pad)],
            dimension_numbers=("NCH", "OIH", "NCH")) + b[None, :, None]

    K = w1.shape[2]
    h = conv1d(x_ncl, w1, b1, K // 2)                    # (B, C1, L)
    B, C1, L = h.shape
    hg = h.reshape(B, n_groups, C1 // n_groups, L)
    mean = hg.mean(axis=(2, 3), keepdims=True)
    var = ((hg - mean) ** 2).mean(axis=(2, 3), keepdims=True)
    hg = (hg - mean) / jnp.sqrt(var + eps)
    h = hg.reshape(B, C1, L) * gamma[None, :, None] + beta[None, :, None]
    h = h * jnp.tanh(jax.nn.softplus(h))                 # Mish
    y = conv1d(h, w2, b2, K // 2)                        # (B, C_out, L)
    y = y.reshape(B, -1)
    if first_action is not None:
        y = y + first_action
    return y


if __name__ == "__main__":
    # Shapes consistent with the module:
    #   input_dim=10, widths=[64], kernel_size=3, n_groups=8,
    #   output_dim=40, action_horizon=4  ->  conv-out channels = 40 // 4 = 10
    B, C_IN, L = 2, 10, 8
    C1, K, N_GROUPS = 64, 3, 8
    OUTPUT_DIM, ACTION_HORIZON = 40, 4
    C_OUT = OUTPUT_DIM // ACTION_HORIZON

    key = jax.random.PRNGKey(0)
    keys = jax.random.split(key, 8)
    params = {
        "w1": 0.1 * jax.random.normal(keys[0], (C1, C_IN, K), jnp.float32),
        "b1": 0.1 * jax.random.normal(keys[1], (C1,), jnp.float32),
        "gamma": 1.0 + 0.1 * jax.random.normal(keys[2], (C1,), jnp.float32),
        "beta": 0.1 * jax.random.normal(keys[3], (C1,), jnp.float32),
        "w2": 0.1 * jax.random.normal(keys[4], (C_OUT, C1, K), jnp.float32),
        "b2": 0.1 * jax.random.normal(keys[5], (C_OUT,), jnp.float32),
    }
    x = jax.random.normal(keys[6], (B, C_IN, L), jnp.float32)          # NCL
    first_action = 0.1 * jax.random.normal(keys[7], (B, C_OUT * L),
                                           jnp.float32)

    prep = prepare_conv1d_head_params(params, N_GROUPS)   # one-time weight prep
    fwd = jax.jit(conv1d_head_forward)

    # Path with first_action (fused add inside the kernel).
    y = jax.block_until_ready(fwd(x, prep, first_action))
    y_ref = _reference_forward(x, params, N_GROUPS, first_action)
    np.testing.assert_allclose(np.asarray(y), np.asarray(y_ref),
                               rtol=1e-4, atol=1e-4)
    assert y.shape == (B, C_OUT * L)

    # Statically-specialized path without first_action (no extra DMA / add).
    y0 = jax.block_until_ready(fwd(x, prep))
    y0_ref = _reference_forward(x, params, N_GROUPS, None)
    np.testing.assert_allclose(np.asarray(y0), np.asarray(y0_ref),
                               rtol=1e-4, atol=1e-4)

    print("KERNEL_OK")
</pallas_src>

<mosaic_0001>
module attributes {stable_mosaic.version = 11 : i64} {
  func.func @_conv1d_head_kernel(%arg0: memref<2x10x8xf32, #tpu.memory_space<vmem>>, %arg1: memref<30x64xf32, #tpu.memory_space<vmem>>, %arg2: memref<64x64xf32, #tpu.memory_space<vmem>>, %arg3: memref<192x10xf32, #tpu.memory_space<vmem>>, %arg4: memref<4x64xf32, #tpu.memory_space<vmem>>, %arg5: memref<2x10x8xf32, #tpu.memory_space<vmem>>, %arg6: memref<2x10x8xf32, #tpu.memory_space<vmem>>) attributes {dimension_semantics = [], scalar_prefetch = 0 : i64, scratch_operands = 0 : i64, tpu.core_type = #tpu.core_type<tc>} {
    %c0 = arith.constant 0 : index
    %c0_0 = arith.constant 0 : index
    %0 = vector.load %arg4[%c0, %c0_0] : memref<4x64xf32, #tpu.memory_space<vmem>>, vector<1x64xf32>
    %c1 = arith.constant 1 : index
    %c0_1 = arith.constant 0 : index
    %1 = vector.load %arg4[%c1, %c0_1] : memref<4x64xf32, #tpu.memory_space<vmem>>, vector<1x64xf32>
    %c2 = arith.constant 2 : index
    %c0_2 = arith.constant 0 : index
    %2 = vector.load %arg4[%c2, %c0_2] : memref<4x64xf32, #tpu.memory_space<vmem>>, vector<1x64xf32>
    %c3 = arith.constant 3 : index
    %c0_3 = arith.constant 0 : index
    %3 = vector.load %arg4[%c3, %c0_3] : memref<4x64xf32, #tpu.memory_space<vmem>>, vector<1x10xf32>
    %4 = tpu.iota {dimensions = array<i32: 0>} : vector<16x1xi32>
    %c8_i32 = arith.constant 8 : i32
    %c0_i32 = arith.constant 0 : i32
    %5 = arith.cmpi eq, %c8_i32, %c0_i32 : i32
    %c1_i32 = arith.constant 1 : i32
    %6 = arith.select %5, %c1_i32, %c8_i32 : i32
    %7 = vector.broadcast %6 : i32 to vector<16x1xi32>
    %8 = arith.remsi %4, %7 : vector<16x1xi32>
    %c0_i32_4 = arith.constant 0 : i32
    %9 = vector.broadcast %c0_i32_4 : i32 to vector<16x1xi32>
    %10 = arith.cmpi ne, %8, %9 : vector<16x1xi32>
    %c0_i32_5 = arith.constant 0 : i32
    %11 = vector.broadcast %c0_i32_5 : i32 to vector<16x1xi32>
    %12 = arith.cmpi slt, %8, %11 : vector<16x1xi32>
    %c0_i32_6 = arith.constant 0 : i32
    %13 = arith.cmpi slt, %6, %c0_i32_6 : i32
    %14 = vector.broadcast %13 : i1 to vector<16x1xi1>
    %15 = vector.broadcast %14 : vector<16x1xi1> to vector<16x1xi1>
    %16 = arith.xori %12, %15 : vector<16x1xi1>
    %17 = arith.andi %16, %10 : vector<16x1xi1>
    %18 = vector.broadcast %6 : i32 to vector<16x1xi32>
    %19 = arith.addi %8, %18 : vector<16x1xi32>
    %20 = arith.select %17, %19, %8 : vector<16x1xi1>, vector<16x1xi32>
    %c0_7 = arith.constant 0 : index
    %c0_8 = arith.constant 0 : index
    %c0_9 = arith.constant 0 : index
    %21 = vector.load %arg0[%c0_7, %c0_8, %c0_9] : memref<2x10x8xf32, #tpu.memory_space<vmem>>, vector<1x10x8xf32>
    %22 = vector.shape_cast %21 : vector<1x10x8xf32> to vector<10x8xf32>
    %23 = tpu.transpose %22, [1, 0] : vector<10x8xf32> -> vector<8x10xf32>
    %c1_10 = arith.constant 1 : index
    %c0_11 = arith.constant 0 : index
    %c0_12 = arith.constant 0 : index
    %24 = vector.load %arg0[%c1_10, %c0_11, %c0_12] : memref<2x10x8xf32, #tpu.memory_space<vmem>>, vector<1x10x8xf32>
    %25 = vector.shape_cast %24 : vector<1x10x8xf32> to vector<10x8xf32>
    %26 = tpu.transpose %25, [1, 0] : vector<10x8xf32> -> vector<8x10xf32>
    %27 = tpu.concatenate %23, %26 in 0 : vector<8x10xf32>, vector<8x10xf32> -> vector<16x10xf32>
    %28 = vector.extract_strided_slice %27 {offsets = [15, 0], sizes = [1, 10], strides = [1, 1]} : vector<16x10xf32> to vector<1x10xf32>
    %29 = vector.extract_strided_slice %27 {offsets = [0, 0], sizes = [15, 10], strides = [1, 1]} : vector<16x10xf32> to vector<15x10xf32>
    %30 = tpu.concatenate %28, %29 in 0 : vector<1x10xf32>, vector<15x10xf32> -> vector<16x10xf32>
    %c1_i32_13 = arith.constant 1 : i32
    %31 = vector.broadcast %c1_i32_13 : i32 to vector<16x1xi32>
    %32 = arith.cmpi slt, %20, %31 : vector<16x1xi32>
    %cst = arith.constant 0.000000e+00 : f32
    %33 = vector.shape_cast %32 : vector<16x1xi1> to vector<16x1xi1>
    %34 = vector.broadcast %33 : vector<16x1xi1> to vector<16x10xi1>
    %35 = vector.broadcast %cst : f32 to vector<16x10xf32>
    %36 = arith.select %34, %35, %30 : vector<16x10xi1>, vector<16x10xf32>
    %37 = vector.extract_strided_slice %27 {offsets = [1, 0], sizes = [15, 10], strides = [1, 1]} : vector<16x10xf32> to vector<15x10xf32>
    %38 = vector.extract_strided_slice %27 {offsets = [0, 0], sizes = [1, 10], strides = [1, 1]} : vector<16x10xf32> to vector<1x10xf32>
    %39 = tpu.concatenate %37, %38 in 0 : vector<15x10xf32>, vector<1x10xf32> -> vector<16x10xf32>
    %c7_i32 = arith.constant 7 : i32
    %40 = vector.broadcast %c7_i32 : i32 to vector<16x1xi32>
    %41 = arith.cmpi sge, %20, %40 : vector<16x1xi32>
    %cst_14 = arith.constant 0.000000e+00 : f32
    %42 = vector.shape_cast %41 : vector<16x1xi1> to vector<16x1xi1>
    %43 = vector.broadcast %42 : vector<16x1xi1> to vector<16x10xi1>
    %44 = vector.broadcast %cst_14 : f32 to vector<16x10xf32>
    %45 = arith.select %43, %44, %39 : vector<16x10xi1>, vector<16x10xf32>
    %46 = tpu.concatenate %36, %27, %45 in 1 : vector<16x10xf32>, vector<16x10xf32>, vector<16x10xf32> -> vector<16x30xf32>
    %c0_15 = arith.constant 0 : index
    %c0_16 = arith.constant 0 : index
    %47 = vector.load %arg1[%c0_15, %c0_16] : memref<30x64xf32, #tpu.memory_space<vmem>>, vector<30x64xf32>
    %cst_17 = arith.constant dense<0.000000e+00> : vector<16x64xf32>
    %48 = tpu.matmul %46, %47, %cst_17 {dimension_numbers = #tpu.dot_dimension_numbers<[1], [0], [0], [1], [0, 0, 1, 1], [], []>} : vector<16x30xf32>, vector<30x64xf32>, vector<16x64xf32> -> vector<16x64xf32>
    %49 = vector.broadcast %0 : vector<1x64xf32> to vector<16x64xf32>
    %50 = arith.addf %48, %49 : vector<16x64xf32>
    %51 = vector.shape_cast %50 : vector<16x64xf32> to vector<2x8x64xf32>
    %cst_18 = arith.constant dense<0.000000e+00> : vector<2x64xf32>
    %52 = vector.multi_reduction <add>, %51, %cst_18 [1] : vector<2x8x64xf32> to vector<2x64xf32>
    %53 = arith.mulf %51, %51 : vector<2x8x64xf32>
    %cst_19 = arith.constant dense<0.000000e+00> : vector<2x64xf32>
    %54 = vector.multi_reduction <add>, %53, %cst_19 [1] : vector<2x8x64xf32> to vector<2x64xf32>
    %55 = tpu.concatenate %52, %54 in 0 : vector<2x64xf32>, vector<2x64xf32> -> vector<4x64xf32>
    %c0_20 = arith.constant 0 : index
    %c0_21 = arith.constant 0 : index
    %56 = vector.load %arg2[%c0_20, %c0_21] : memref<64x64xf32, #tpu.memory_space<vmem>>, vector<64x64xf32>
    %cst_22 = arith.constant dense<0.000000e+00> : vector<4x64xf32>
    %57 = tpu.matmul %55, %56, %cst_22 {dimension_numbers = #tpu.dot_dimension_numbers<[1], [0], [0], [1], [0, 0, 1, 1], [], []>} : vector<4x64xf32>, vector<64x64xf32>, vector<4x64xf32> -> vector<4x64xf32>
    %cst_23 = arith.constant 1.250000e-01 : f32
    %58 = vector.broadcast %cst_23 : f32 to vector<4x64xf32>
    %59 = arith.mulf %57, %58 : vector<4x64xf32>
    %60 = vector.extract_strided_slice %59 {offsets = [0, 0], sizes = [2, 64], strides = [1, 1]} : vector<4x64xf32> to vector<2x64xf32>
    %61 = vector.extract_strided_slice %59 {offsets = [2, 0], sizes = [2, 64], strides = [1, 1]} : vector<4x64xf32> to vector<2x64xf32>
    %62 = arith.mulf %60, %60 : vector<2x64xf32>
    %63 = arith.subf %61, %62 : vector<2x64xf32>
    %cst_24 = arith.constant 9.99999974E-6 : f32
    %64 = vector.broadcast %cst_24 : f32 to vector<2x64xf32>
    %65 = arith.addf %63, %64 : vector<2x64xf32>
    %66 = math.rsqrt %65 : vector<2x64xf32>
    %67 = vector.broadcast %1 : vector<1x64xf32> to vector<2x64xf32>
    %68 = arith.mulf %66, %67 : vector<2x64xf32>
    %69 = arith.mulf %60, %68 : vector<2x64xf32>
    %70 = vector.broadcast %2 : vector<1x64xf32> to vector<2x64xf32>
    %71 = arith.subf %70, %69 : vector<2x64xf32>
    %72 = vector.shape_cast %68 : vector<2x64xf32> to vector<2x1x64xf32>
    %73 = vector.broadcast %72 : vector<2x1x64xf32> to vector<2x8x64xf32>
    %74 = arith.mulf %51, %73 : vector<2x8x64xf32>
    %75 = vector.shape_cast %71 : vector<2x64xf32> to vector<2x1x64xf32>
    %76 = vector.broadcast %75 : vector<2x1x64xf32> to vector<2x8x64xf32>
    %77 = arith.addf %74, %76 : vector<2x8x64xf32>
    %78 = vector.shape_cast %77 : vector<2x8x64xf32> to vector<16x64xf32>
    %cst_25 = arith.constant 2.000000e+01 : f32
    %79 = vector.broadcast %cst_25 : f32 to vector<16x64xf32>
    %80 = arith.minimumf %78, %79 : vector<16x64xf32>
    %81 = math.exp %80 : vector<16x64xf32>
    %cst_26 = arith.constant 2.000000e+00 : f32
    %82 = vector.broadcast %cst_26 : f32 to vector<16x64xf32>
    %83 = arith.addf %81, %82 : vector<16x64xf32>
    %84 = arith.mulf %81, %83 : vector<16x64xf32>
    %cst_27 = arith.constant 2.000000e+00 : f32
    %85 = vector.broadcast %cst_27 : f32 to vector<16x64xf32>
    %86 = arith.addf %84, %85 : vector<16x64xf32>
    %87 = arith.divf %84, %86 : vector<16x64xf32>
    %88 = arith.mulf %78, %87 : vector<16x64xf32>
    %89 = vector.extract_strided_slice %88 {offsets = [15, 0], sizes = [1, 64], strides = [1, 1]} : vector<16x64xf32> to vector<1x64xf32>
    %90 = vector.extract_strided_slice %88 {offsets = [0, 0], sizes = [15, 64], strides = [1, 1]} : vector<16x64xf32> to vector<15x64xf32>
    %91 = tpu.concatenate %89, %90 in 0 : vector<1x64xf32>, vector<15x64xf32> -> vector<16x64xf32>
    %c1_i32_28 = arith.constant 1 : i32
    %92 = vector.broadcast %c1_i32_28 : i32 to vector<16x1xi32>
    %93 = arith.cmpi slt, %20, %92 : vector<16x1xi32>
    %cst_29 = arith.constant 0.000000e+00 : f32
    %94 = vector.shape_cast %93 : vector<16x1xi1> to vector<16x1xi1>
    %95 = vector.broadcast %94 : vector<16x1xi1> to vector<16x64xi1>
    %96 = vector.broadcast %cst_29 : f32 to vector<16x64xf32>
    %97 = arith.select %95, %96, %91 : vector<16x64xi1>, vector<16x64xf32>
    %98 = vector.extract_strided_slice %88 {offsets = [1, 0], sizes = [15, 64], strides = [1, 1]} : vector<16x64xf32> to vector<15x64xf32>
    %99 = vector.extract_strided_slice %88 {offsets = [0, 0], sizes = [1, 64], strides = [1, 1]} : vector<16x64xf32> to vector<1x64xf32>
    %100 = tpu.concatenate %98, %99 in 0 : vector<15x64xf32>, vector<1x64xf32> -> vector<16x64xf32>
    %c7_i32_30 = arith.constant 7 : i32
    %101 = vector.broadcast %c7_i32_30 : i32 to vector<16x1xi32>
    %102 = arith.cmpi sge, %20, %101 : vector<16x1xi32>
    %cst_31 = arith.constant 0.000000e+00 : f32
    %103 = vector.shape_cast %102 : vector<16x1xi1> to vector<16x1xi1>
    %104 = vector.broadcast %103 : vector<16x1xi1> to vector<16x64xi1>
    %105 = vector.broadcast %cst_31 : f32 to vector<16x64xf32>
    %106 = arith.select %104, %105, %100 : vector<16x64xi1>, vector<16x64xf32>
    %107 = tpu.concatenate %97, %88, %106 in 1 : vector<16x64xf32>, vector<16x64xf32>, vector<16x64xf32> -> vector<16x192xf32>
    %c0_32 = arith.constant 0 : index
    %c0_33 = arith.constant 0 : index
    %108 = vector.load %arg3[%c0_32, %c0_33] : memref<192x10xf32, #tpu.memory_space<vmem>>, vector<192x10xf32>
    %cst_34 = arith.constant dense<0.000000e+00> : vector<16x10xf32>
    %109 = tpu.matmul %107, %108, %cst_34 {dimension_numbers = #tpu.dot_dimension_numbers<[1], [0], [0], [1], [0, 0, 1, 1], [], []>} : vector<16x192xf32>, vector<192x10xf32>, vector<16x10xf32> -> vector<16x10xf32>
    %110 = vector.broadcast %3 : vector<1x10xf32> to vector<16x10xf32>
    %111 = arith.addf %109, %110 : vector<16x10xf32>
    %112 = vector.shape_cast %111 : vector<16x10xf32> to vector<2x8x10xf32>
    %113 = vector.extract_strided_slice %112 {offsets = [0, 0, 0], sizes = [1, 8, 10], strides = [1, 1, 1]} : vector<2x8x10xf32> to vector<1x8x10xf32>
    %114 = vector.shape_cast %113 : vector<1x8x10xf32> to vector<8x10xf32>
    %115 = tpu.transpose %114, [1, 0] : vector<8x10xf32> -> vector<10x8xf32>
    %c0_35 = arith.constant 0 : index
    %c0_36 = arith.constant 0 : index
    %c0_37 = arith.constant 0 : index
    %116 = vector.load %arg5[%c0_35, %c0_36, %c0_37] : memref<2x10x8xf32, #tpu.memory_space<vmem>>, vector<1x10x8xf32>
    %117 = vector.shape_cast %116 : vector<1x10x8xf32> to vector<10x8xf32>
    %118 = arith.addf %115, %117 : vector<10x8xf32>
    %c0_38 = arith.constant 0 : index
    %c0_39 = arith.constant 0 : index
    %c0_40 = arith.constant 0 : index
    %119 = vector.load %arg6[%c0_38, %c0_39, %c0_40] : memref<2x10x8xf32, #tpu.memory_space<vmem>>, vector<1x10x8xf32>
    %120 = vector.shape_cast %119 : vector<1x10x8xf32> to vector<10x8xf32>
    %121 = vector.shape_cast %118 : vector<10x8xf32> to vector<1x10x8xf32>
    tpu.vector_store %arg6[%c0_38, %c0_39, %c0_40], %121 {strides = array<i32>} : memref<2x10x8xf32, #tpu.memory_space<vmem>>, vector<1x10x8xf32>,
    %122 = vector.extract_strided_slice %112 {offsets = [1, 0, 0], sizes = [1, 8, 10], strides = [1, 1, 1]} : vector<2x8x10xf32> to vector<1x8x10xf32>
    %123 = vector.shape_cast %122 : vector<1x8x10xf32> to vector<8x10xf32>
    %124 = tpu.transpose %123, [1, 0] : vector<8x10xf32> -> vector<10x8xf32>
    %c1_41 = arith.constant 1 : index
    %c0_42 = arith.constant 0 : index
    %c0_43 = arith.constant 0 : index
    %125 = vector.load %arg5[%c1_41, %c0_42, %c0_43] : memref<2x10x8xf32, #tpu.memory_space<vmem>>, vector<1x10x8xf32>
    %126 = vector.shape_cast %125 : vector<1x10x8xf32> to vector<10x8xf32>
    %127 = arith.addf %124, %126 : vector<10x8xf32>
    %c1_44 = arith.constant 1 : index
    %c0_45 = arith.constant 0 : index
    %c0_46 = arith.constant 0 : index
    %128 = vector.load %arg6[%c1_44, %c0_45, %c0_46] : memref<2x10x8xf32, #tpu.memory_space<vmem>>, vector<1x10x8xf32>
    %129 = vector.shape_cast %128 : vector<1x10x8xf32> to vector<10x8xf32>
    %130 = vector.shape_cast %127 : vector<10x8xf32> to vector<1x10x8xf32>
    tpu.vector_store %arg6[%c1_44, %c0_45, %c0_46], %130 {strides = array<i32>} : memref<2x10x8xf32, #tpu.memory_space<vmem>>, vector<1x10x8xf32>,
    return
  }
}

</mosaic_0001>

<bundles_post_ra>
// kernel: conv1d_head_forward.1
= control target key start
LH: loop header
LB: loop body
LE: loop exit
PB: predicated region body
PF: predicated region fallthrough
CT: control target
= control target key end

     0   :  { %v27_v7 = vlaneseq  ;;  %vm192_vm0 = vcmask 1045504   ;;  %vm864_vm1 = vmmov 1   ;;  %vm141_vm3 = vcmask 1046528   ;;  %s865_s12 = smov 10   ;;  %s871_s28 = smov 64   ;;  %s1146_s0 = inlined_call_operand.vmem [shape: f32[2,10,8], index: 0, kind: input, shape index: {}]   ;;  %s1147_s1 = inlined_call_operand.vmem [shape: f32[30,64], index: 1, kind: input, shape index: {}]   ;;  %s1148_s2 = inlined_call_operand.vmem [shape: f32[64,64], index: 2, kind: input, shape index: {}]   ;;  %s1149_s4 = inlined_call_operand.vmem [shape: f32[4,64], index: 4, kind: input, shape index: {}]   ;;  %s1150_s3 = inlined_call_operand.vmem [shape: f32[192,10], index: 3, kind: input, shape index: {}]   ;;  %s1151_s5 = inlined_call_operand.vmem [shape: f32[2,10,8], index: 5, kind: input, shape index: {}]   ;;  %s1152_s6 = inlined_call_operand.vmem [shape: f32[2,10,8], index: 6, kind: output, shape index: {}]  }
   0x1   :  { %v727_v0 = vld [vmem:[%s1146_s0 + $0x10] sm:$0xff]  ;;  %v54_v1 = vld [vmem:[%s1146_s0] sm:$0xff]  ;;  %v728_v2 = vld [vmem:[%s1146_s0 + $0x18] sm:$0x3]  ;;  %vm127_vm6 = vcmask 1040384   ;;  %vm171_vm8 = vcmask 80896  }
   0x2   :  { %91 = vxpose.xlu1.b32.start [1/2] (short) (narrow) %v727_v0, 8  ;;  %56 = vxpose.xlu0.b32.start [1/2] (short) (narrow) %v54_v1, 8  ;;  %v55_v3 = vld [vmem:[%s1146_s0 + $0x8] sm:$0x3]  ;;  %v177_v4 = vld [vmem:[%s1147_s1] sm:$0xff]  ;;  %v179_v8 = vld [vmem:[%s1147_s1 + $0x10] sm:$0xff] }
   0x3   :  { %v178_v5 = vld [vmem:[%s1147_s1 + $0x8] sm:$0xff]  ;;  %v180_v9 = vld [vmem:[%s1147_s1 + $0x18] sm:$0x3f]  ;;  %vm793_vm2 = vmpackc.low %vm192_vm0, %vm864_vm1  ;;  %v931_v11 = vshrl.u32 %v27_v7, 7  ;;  %s866_s1 = smov 20   ;;  %vm174_vm9 = vcmask 162816  }
   0x4   :  { %v788_v6 = vpack.c.bf16 %v178_v5, %v177_v4  ;;  %v792_v10 = vpack.c.bf16 %v180_v9, %v179_v8  ;;  %vm185_vm10 = vcmask 244736   ;;  %v314_v41 = vld [vmem:[%s1148_s2] sm:$0xff]  ;;  %v315_v42 = vld [vmem:[%s1148_s2 + $0x8] sm:$0xff]  ;;  %v867_v44 = vmov 0.0|0.0   ;;  %v316_v45 = vld [vmem:[%s1148_s2 + $0x10] sm:$0xff] }
   0x5   :  { %v34_v12 = vand.u32 7, %v931_v11  ;;  %v29_v13 = vadd.s32 8, %v931_v11  ;;  %v799_v43 = vpack.c.bf16 %v315_v42, %v314_v41  ;;  %810 = vmatprep.subr.bf16.mxu0 %v867_v44  ;;  %v317_v46 = vld [vmem:[%s1148_s2 + $0x18] sm:$0xff]  ;;  %v318_v48 = vld [vmem:[%s1148_s2 + $0x20] sm:$0xff]  ;;  %v319_v49 = vld [vmem:[%s1148_s2 + $0x28] sm:$0xff]  ;;  %vm868_vm12 = vmmov 0  }
   0x6   :  { %92 = vxpose.xlu1.b32.end [2/2] (short) (narrow) %v728_v2, 8  ;;  %57 = vxpose.xlu0.b32.end [2/2] (short) (narrow) %v55_v3, 8  ;;  %v802_v47 = vpack.c.bf16 %v317_v46, %v316_v45  ;;  %v805_v50 = vpack.c.bf16 %v319_v49, %v318_v48  ;;  %v320_v51 = vld [vmem:[%s1148_s2 + $0x30] sm:$0xff]  ;;  %v321_v52 = vld [vmem:[%s1148_s2 + $0x38] sm:$0xff]  ;;  %v869_v54 = vmov 0.0   ;;  %vm271_vm13 = vcmask 523264  }
   0x7   :  { %789 = vmatprep.subr.bf16.mxu1 %v788_v6  ;;  %vm935_vm4 = vcmp.ge.s32.totalorder %v34_v12, 7  ;;  %v41_v19 = vand.u32 7, %v29_v13  ;;  %vm950_vm7 = vcmp.lt.s32.totalorder %v34_v12, 1  ;;  %v808_v53 = vpack.c.bf16 %v321_v52, %v320_v51  ;;  %v729_v55 = vld [vmem:[%s1149_s4] ss:$0 sm:$0xff]  ;;  %v539_v41 = vld [vmem:[%s1150_s3 + $0x28] sm:$0xff] }
   0x8   :  { %791 = vmatpush3.bf16.msra.mxu1 %v788_v6  ;;  %vm304_vm14 = vcmask 1041409   ;;  %vm309_vm15 = vcmask 1043459   ;;  %vm312_vm0 = vcmask 1041408   ;;  %v541_v45 = vld [vmem:[%s1150_s3 + $0x38] sm:$0xff]  ;;  %v543_v48 = vld [vmem:[%s1150_s3 + $0x48] sm:$0xff]  ;;  %v675_v32 = vld [vmem:[%s1151_s5] sm:$0xff] }
   0x9   :  { %794 = vmatprep.subr.msk.bf16.mxu1 %vm793_vm2, %v792_v10  ;;  %vm943_vm5 = vcmp.ge.s32.totalorder %v41_v19, 7  ;;  %vm956_vm11 = vcmp.lt.s32.totalorder %v41_v19, 1  ;;  %v545_v51 = vld [vmem:[%s1150_s3 + $0x58] sm:$0xff]  ;;  %v736_v29 = vld [vmem:[%s1149_s4 + $0x3] ss:$0 sm:$0xff]  ;;  %vm679_vm1 = vcmask 64512  }
   0xc   :  { %797 = vmatpush3.bf16.msk.msra.mxu1 %vm793_vm2, %v792_v10  ;;  %vm681_vm2 = vcmask 58368  }
   0xd   :  { %798 = vmatprep.subr.bf16.mxu1 %v867_v44 }
  0x82   :  { %v107_v14 = vpop.trf.xlu1  ;;  %v72_v15 = vpop.trf.xlu0 }
  0x83   :  { %v143_v16 = vrot.slane %v107_v14, 1  ;;  %v142_v17 = vrot.slane %v72_v15, 1  ;;  %159 = vrot.lane.b32.xlu1 %v107_v14, %s865_s12  ;;  %157 = vrot.lane.b32.xlu0 %v72_v15, %s865_s12  ;;  %v124_v25 = vrot.slane %v107_v14, 7  ;;  %v128_v26 = vrot.slane %v72_v15, 7 }
  0x85   :  { %v144_v20 = vsel %vm141_vm3, %v142_v17, %v143_v16  ;;  %v148_v22 = vsel %vm141_vm3, %v143_v16, %v142_v17  ;;  %v132_v28 = vsel %vm127_vm6, %v124_v25, %v128_v26  ;;  %v129_v33 = vsel %vm127_vm6, %v128_v26, %v124_v25 }
  0x86   :  { %v155_v21 = vsel %vm935_vm4, 0.0, %v144_v20  ;;  %v156_v24 = vsel %vm943_vm5, 0.0, %v148_v22  ;;  %v139_v31 = vsel %vm950_vm7, 0.0, %v132_v28  ;;  %v140_v37 = vsel %vm956_vm11, 0.0, %v129_v33 }
  0x87   :  { %165 = vrot.lane.b32.xlu1 %v155_v21, %s866_s1 }
  0x8b   :  { %167 = vrot.lane.b32.xlu1 %v156_v24, %s866_s1 }
  0xf5   :  { %v160_v27 = vpop.permute.xlu1 %159  ;;  %v158_v30 = vpop.permute.xlu0 %157 }
  0xf6   :  { %v172_v34 = vsel %vm171_vm8, %v139_v31, %v158_v30  ;;  %v173_v38 = vsel %vm171_vm8, %v140_v37, %v160_v27 }
  0xf9   :  { %v166_v35 = vpop.permute.xlu1 %165 }
  0xfa   :  { %v175_v36 = vsel %vm174_vm9, %v172_v34, %v166_v35  ;;  %v534_v34 = vld [vmem:[%s1150_s3] sm:$0xff]  ;;  %v535_v35 = vld [vmem:[%s1150_s3 + $0x8] sm:$0xff] }
  0xfb   :  { %766 = vmatprep.mubr.msk.f32.mxu1 %vm185_vm10, %v175_v36  ;;  %v536_v36 = vld [vmem:[%s1150_s3 + $0x10] sm:$0xff]  ;;  %v811_v37 = vpack.c.bf16 %v535_v35, %v534_v34 }
  0xfd   :  { %v168_v39 = vpop.permute.xlu1 %167  ;;  %812 = vmatpush1.bf16.msra.mxu0 %v811_v37 }
  0xfe   :  { %v176_v40 = vsel %vm174_vm9, %v173_v38, %v168_v39  ;;  %v537_v38 = vld [vmem:[%s1150_s3 + $0x18] sm:$0xff]  ;;  %813 = vmatprep.subr.bf16.mxu0 %v867_v44 }
  0xff   :  { %767 = vmatmul.mubr.msk.f32.vlgmr.msra.gmra.mrb[0].mxu1 %vm185_vm10, %v176_v40  ;;  %v814_v39 = vpack.c.bf16 %v537_v38, %v536_v36  ;;  %v538_v40 = vld [vmem:[%s1150_s3 + $0x20] sm:$0xff] }
 0x100   :  { %800 = vmatpush3.bf16.msra.mxu1 %v799_v43  ;;  %785 = vmatprep.mubr.msk.f32.mxu1 %vm868_vm12, %v869_v54  ;;  %v817_v42 = vpack.c.bf16 %v539_v41, %v538_v40  ;;  %v540_v43 = vld [vmem:[%s1150_s3 + $0x30] sm:$0xff]  ;;  %v547_v54 = vld [vmem:[%s1150_s3 + $0x68] sm:$0xff] }
 0x101   :  { %801 = vmatprep.subr.bf16.mxu1 %v867_v44  ;;  %815 = vmatpush1.bf16.msra.mxu0 %v814_v39  ;;  %v820_v46 = vpack.c.bf16 %v541_v45, %v540_v43 }
 0x102   :  { %816 = vmatprep.subr.bf16.mxu0 %v867_v44 }
 0x104   :  { %803 = vmatpush3.bf16.msra.mxu1 %v802_v47  ;;  %v542_v47 = vld [vmem:[%s1150_s3 + $0x40] sm:$0xff] }
 0x105   :  { %804 = vmatprep.subr.bf16.mxu1 %v867_v44  ;;  %818 = vmatpush1.bf16.msra.mxu0 %v817_v42  ;;  %v823_v49 = vpack.c.bf16 %v543_v48, %v542_v47 }
 0x106   :  { %819 = vmatprep.subr.bf16.mxu0 %v867_v44 }
 0x108   :  { %806 = vmatpush3.bf16.msra.mxu1 %v805_v50  ;;  %v544_v50 = vld [vmem:[%s1150_s3 + $0x50] sm:$0xff] }
 0x109   :  { %807 = vmatprep.subr.bf16.mxu1 %v867_v44  ;;  %821 = vmatpush1.bf16.msra.mxu0 %v820_v46  ;;  %v826_v52 = vpack.c.bf16 %v545_v51, %v544_v50 }
 0x10a   :  { %822 = vmatprep.subr.bf16.mxu0 %v867_v44 }
 0x10c   :  { %809 = vmatpush3.bf16.msra.mxu1 %v808_v53  ;;  %v546_v53 = vld [vmem:[%s1150_s3 + $0x60] sm:$0xff] }
 0x10d   :  { %824 = vmatpush1.bf16.msra.mxu0 %v823_v49 }
 0x10e   :  { %825 = vmatprep.subr.bf16.mxu0 %v867_v44 }
 0x111   :  { %827 = vmatpush1.bf16.msra.mxu0 %v826_v52 }
 0x112   :  { %828 = vmatprep.subr.bf16.mxu0 %v867_v44 }
 0x1d2   :  { %v768_v56 = vpop.f32.mrb[0].mxu1 }
 0x1d3   :  { %v995_v57 = vadd.f32 %v768_v56, %v729_v55  ;;  %v262_v58 = vpop.f32.mrb[1].mxu1  ;;  %v548_v56 = vld [vmem:[%s1150_s3 + $0x70] sm:$0xff] }
 0x1d4   :  { %v997_v59 = vadd.f32 %v729_v55, %v262_v58  ;;  %v829_v55 = vpack.c.bf16 %v547_v54, %v546_v53  ;;  %v549_v58 = vld [vmem:[%s1150_s3 + $0x78] sm:$0xff] }
 0x1d5   :  { %v279_v60 = vsel %vm271_vm13, %v995_v57, 0.0  ;;  %v287_v61 = vmul.f32 %v995_v57, %v995_v57 }
 0x1d6   :  { %v280_v62 = vrot.slane %v279_v60, 4  ;;  %v272_v63 = vsel %vm271_vm13, %v997_v59, 0.0  ;;  %v286_v0 = vmul.f32 %v997_v59, %v997_v59  ;;  %830 = vmatpush1.bf16.msra.mxu0 %v829_v55 }
 0x1d7   :  { %v295_v1 = vsel %vm271_vm13, %v287_v61, 0.0  ;;  %v273_v2 = vrot.slane %v272_v63, 4  ;;  %831 = vmatprep.subr.bf16.mxu0 %v867_v44  ;;  %v550_v61 = vld [vmem:[%s1150_s3 + $0x80] sm:$0xff] }
 0x1d8   :  { %v281_v3 = vadd.f32 %v280_v62, %v279_v60  ;;  %v296_v4 = vrot.slane %v295_v1, 4  ;;  %v288_v5 = vsel %vm271_vm13, %v286_v0, 0.0  ;;  %v832_v60 = vpack.c.bf16 %v549_v58, %v548_v56  ;;  %v551_v62 = vld [vmem:[%s1150_s3 + $0x88] sm:$0xff]  ;;  %v552_v0 = vld [vmem:[%s1150_s3 + $0x90] sm:$0xff] }
 0x1d9   :  { %v274_v6 = vadd.f32 %v273_v2, %v272_v63  ;;  %v289_v7 = vrot.slane %v288_v5, 4  ;;  %v835_v63 = vpack.c.bf16 %v551_v62, %v550_v61 }
 0x1da   :  { %v282_v8 = vrot.slane %v281_v3, 2  ;;  %v297_v9 = vadd.f32 %v296_v4, %v295_v1  ;;  %833 = vmatpush1.bf16.msra.mxu0 %v832_v60  ;;  %v553_v1 = vld [vmem:[%s1150_s3 + $0x98] sm:$0xff]  ;;  %v555_v4 = vld [vmem:[%s1150_s3 + $0xa8] sm:$0xff] }
 0x1db   :  { %v275_v10 = vrot.slane %v274_v6, 2  ;;  %v290_v12 = vadd.f32 %v289_v7, %v288_v5  ;;  %834 = vmatprep.subr.bf16.mxu0 %v867_v44  ;;  %v838_v2 = vpack.c.bf16 %v553_v1, %v552_v0  ;;  %v557_v7 = vld [vmem:[%s1150_s3 + $0xb8] sm:$0xff] }
 0x1dc   :  { %v283_v13 = vadd.f32 %v282_v8, %v281_v3  ;;  %v298_v14 = vrot.slane %v297_v9, 2  ;;  %v554_v3 = vld [vmem:[%s1150_s3 + $0xa0] sm:$0xff] }
 0x1dd   :  { %v276_v15 = vadd.f32 %v275_v10, %v274_v6  ;;  %v291_v16 = vrot.slane %v290_v12, 2  ;;  %v841_v5 = vpack.c.bf16 %v555_v4, %v554_v3  ;;  %v556_v6 = vld [vmem:[%s1150_s3 + $0xb0] sm:$0xff] }
 0x1de   :  { %v284_v17 = vrot.slane %v283_v13, 1  ;;  %v299_v19 = vadd.f32 %v298_v14, %v297_v9  ;;  %836 = vmatpush1.bf16.msra.mxu0 %v835_v63  ;;  %v844_v8 = vpack.c.bf16 %v557_v7, %v556_v6 }
 0x1df   :  { %v277_v20 = vrot.slane %v276_v15, 1  ;;  %v292_v21 = vadd.f32 %v291_v16, %v290_v12  ;;  %837 = vmatprep.subr.bf16.mxu0 %v867_v44 }
 0x1e0   :  { %v300_v22 = vrot.slane %v299_v19, 1  ;;  %v285_v24 = vadd.f32 %v284_v17, %v283_v13  ;;  %v870_v17 = vmov 1966171168  }
 0x1e1   :  { %v278_v25 = vadd.f32 %v277_v20, %v276_v15  ;;  %v293_v26 = vrot.slane %v292_v21, 1 }
 0x1e2   :  { %v301_v27 = vadd.f32 %v300_v22, %v299_v19  ;;  %839 = vmatpush1.bf16.msra.mxu0 %v838_v2  ;;  %v418_v19 = vunpack.c.l.s4 %v870_v17 }
 0x1e3   :  { %v294_v28 = vadd.f32 %v293_v26, %v292_v21  ;;  %v305_v30 = vsel %vm304_vm14, %v285_v24, %v278_v25  ;;  %840 = vmatprep.subr.bf16.mxu0 %v867_v44  ;;  %v734_v21 = vld [vmem:[%s1149_s4 + $0x1] ss:$0 sm:$0xff] }
 0x1e4   :  { %v419_v20 = vunpack.c.0.s8 %v418_v19 }
 0x1e5   :  { %v310_v31 = vsel %vm309_vm15, %v301_v27, %v294_v28  ;;  %v735_v27 = vld [vmem:[%s1149_s4 + $0x2] ss:$0 sm:$0xff] }
 0x1e6   :  { %v313_v33 = vsel %vm312_vm0, %v305_v30, %v310_v31  ;;  %842 = vmatpush1.bf16.msra.mxu0 %v841_v5  ;;  %v422_v22 = vsub.s32 %v419_v20, %v931_v11 }
 0x1e7   :  { %786 = vmatmul.mubr.msk.f32.vlgmr.msra.gmra.mrb[2].mxu1 %vm271_vm13, %v313_v33  ;;  %843 = vmatprep.subr.bf16.mxu0 %v867_v44  ;;  %v443_v33 = vsub.s32 0, %v931_v11 }
 0x1ea   :  { %845 = vmatpush1.bf16.msra.mxu0 %v844_v8 }
 0x2ba   :  { %v391_v9 = vpop.f32.mrb[2].mxu1 }
 0x2bb   :  { %v395_v10 = vmul.f32 0.125, %v391_v9  ;;  %v787_v12 = vpop.f32.mrb[3].mxu1 }
 0x2bd   :  { %v396_v13 = vmul.f32 %v395_v10, %v395_v10 }
 0x2bf   :  { %v398_v14 = vrot.slane %v396_v13, 6 }
 0x2c1   :  { %v400_v15 = vsub.f32 %v395_v10, %v398_v14 }
 0x2c3   :  { %v401_v16 = vadd.f32 1e-05, %v400_v15 }
 0x2c5   :  { %854 = vrsqrt.f32 %v401_v16 }
 0x2cf   :  { %v855_v24 = vpop.eup %854 }
 0x2d0   :  { %v407_v44 = vmul.f32 %v855_v24, %v734_v21 }
 0x2d2   :  { %v409_v25 = vrot.slane %v407_v44, 2  ;;  %v423_v26 = vrot.slane %v407_v44, %v422_v22 }
 0x2d4   :  { %v411_v28 = vmul.f32 %v409_v25, %v395_v10  ;;  %v424_v30 = vcombine.high %v423_v26, %v423_v26  ;;  %v431_v31 = vrot.slane %v423_v26, %v422_v22 }
 0x2d6   :  { %v416_v34 = vsub.f32 %v735_v27, %v411_v28  ;;  %v439_v35 = vcombine.high %v431_v31, %v431_v31  ;;  %v438_v36 = vrot.slane %v424_v30, %v422_v22  ;;  %v739_v28 = vld [vmem:[%s1151_s5 + $0x10] sm:$0xff]  ;;  %v676_v30 = vld [vmem:[%s1151_s5 + $0x8] sm:$0x3] }
 0x2d8   :  { %v460_v37 = vrot.slane %v416_v34, %v422_v22  ;;  %v444_v38 = vrot.slane %v439_v35, %v443_v33  ;;  %v440_v39 = vcombine.high %v438_v36, %v438_v36  ;;  %v740_v36 = vld [vmem:[%s1151_s5 + $0x18] sm:$0x3] }
 0x2da   :  { %v461_v40 = vcombine.high %v460_v37, %v460_v37  ;;  %v468_v41 = vrot.slane %v460_v37, %v422_v22  ;;  %v448_v42 = vrot.slane %v440_v39, %v443_v33  ;;  %v451_v43 = vmul.f32 %v444_v38, %v997_v59 }
 0x2dc   :  { %v479_v45 = vrot.slane %v468_v41, %v443_v33  ;;  %v475_v46 = vrot.slane %v461_v40, %v422_v22  ;;  %v452_v48 = vmul.f32 %v448_v42, %v995_v57 }
 0x2de   :  { %v486_v47 = vadd.f32 %v479_v45, %v451_v43  ;;  %v483_v49 = vrot.slane %v475_v46, %v443_v33 }
 0x2e0   :  { %v488_v50 = vmin.f32 %v486_v47, 20.0  ;;  %v487_v51 = vadd.f32 %v483_v49, %v452_v48 }
 0x2e2   :  { %v490_v11 = vmul.f32 1.442695, %v488_v50  ;;  %v489_v52 = vmin.f32 %v487_v51, 20.0 }
 0x2e4   :  { %856 = vpow2.f32 %v490_v11  ;;  %v492_v53 = vmul.f32 1.442695, %v489_v52 }
 0x2e6   :  { %858 = vpow2.f32 %v492_v53 }
 0x2ee   :  { %v857_v54 = vpop.eup %856 }
 0x2ef   :  { %v494_v55 = vadd.f32 2.0, %v857_v54 }
 0x2f0   :  { %v859_v56 = vpop.eup %858 }
 0x2f1   :  { %v496_v58 = vmul.f32 %v857_v54, %v494_v55  ;;  %v495_v60 = vadd.f32 2.0, %v859_v56 }
 0x2f3   :  { %v498_v61 = vadd.f32 2.0, %v496_v58  ;;  %v497_v59 = vmul.f32 %v859_v56, %v495_v60 }
 0x2f5   :  { %860 = vrcp.f32 %v498_v61  ;;  %v499_v62 = vadd.f32 2.0, %v497_v59 }
 0x2f7   :  { %862 = vrcp.f32 %v499_v62 }
 0x2ff   :  { %v861_v63 = vpop.eup %860 }
 0x300   :  { %v501_v57 = vmul.f32 %v861_v63, %v496_v58 }
 0x301   :  { %v863_v0 = vpop.eup %862 }
 0x302   :  { %v504_v1 = vmul.f32 %v501_v57, %v486_v47  ;;  %v503_v2 = vmul.f32 %v863_v0, %v497_v59 }
 0x304   :  { %526 = vrot.lane.b32.xlu1 %v504_v1, %s871_s28  ;;  %v505_v3 = vmul.f32 %v503_v2, %v487_v51  ;;  %v510_v4 = vrot.slane %v504_v1, 7  ;;  %v517_v6 = vrot.slane %v504_v1, 1 }
 0x306   :  { %528 = vrot.lane.b32.xlu0 %v505_v3, %s871_s28  ;;  %v507_v5 = vrot.slane %v505_v3, 7  ;;  %v518_v7 = vrot.slane %v505_v3, 1 }
 0x308   :  { %v519_v8 = vsel %vm141_vm3, %v517_v6, %v518_v7  ;;  %v514_v9 = vsel %vm127_vm6, %v507_v5, %v510_v4  ;;  %v523_v10 = vsel %vm141_vm3, %v518_v7, %v517_v6  ;;  %v511_v12 = vsel %vm127_vm6, %v510_v4, %v507_v5 }
 0x309   :  { %v524_v13 = vsel %vm935_vm4, 0.0, %v519_v8  ;;  %v515_v15 = vsel %vm950_vm7, 0.0, %v514_v9  ;;  %v525_v19 = vsel %vm943_vm5, 0.0, %v523_v10  ;;  %v516_v20 = vsel %vm956_vm11, 0.0, %v511_v12 }
 0x30a   :  { %737 = vmatprep.mubr.msk.f32.mxu0 %vm271_vm13, %v524_v13 }
 0x376   :  { %v527_v14 = vpop.permute.xlu1 %526 }
 0x377   :  { %v532_v16 = vsel %vm271_vm13, %v515_v15, %v527_v14 }
 0x378   :  { %v529_v17 = vpop.permute.xlu0 %528  ;;  %633 = vmatmul.mubr.f32.vlgmr.msra.gmra.mrb[0].mxu0 %v532_v16 }
 0x379   :  { %738 = vmatprep.mubr.msk.f32.mxu0 %vm271_vm13, %v525_v19  ;;  %v533_v18 = vsel %vm271_vm13, %v516_v20, %v529_v17 }
 0x37c   :  { %638 = vmatmul.mubr.f32.gmra.mrb[2].mxu0 %v533_v18 }
 0x44b   :  { %v634_v21 = vpop.f32.mrb[0].mxu0 }
 0x44c   :  { %v635_v22 = vadd.f32 %v736_v29, %v634_v21  ;;  %v636_v24 = vpop.f32.mrb[1].mxu0 }
 0x44e   :  { %643 = vxpose.xlu1.b32.start.end [1/1] (short) (narrow) %v635_v22, 16 }
 0x44f   :  { %v639_v44 = vpop.f32.mrb[2].mxu0 }
 0x450   :  { %v640_v25 = vadd.f32 %v736_v29, %v639_v44  ;;  %v641_v23 = vpop.f32.mrb[3].mxu0 }
 0x452   :  { %683 = vxpose.xlu0.b32.start.end [1/1] (short) (narrow) %v640_v25, 16 }
 0x4ce   :  { %v659_v26 = vpop.trf.xlu1 }
 0x4cf   :  { %v677_v27 = vadd.f32 %v675_v32, %v659_v26 }
 0x4d1   :  { %680 = vst.msk [vmem:[%s1152_s6] sm:$0xff] %vm679_vm1, %v677_v27 }
 0x4d2   :  { %v699_v31 = vpop.trf.xlu0  ;;  %v660_v33 = vpop.trf.xlu1 }
 0x4d3   :  { %v718_v34 = vadd.f32 %v739_v28, %v699_v31  ;;  %v678_v35 = vadd.f32 %v676_v30, %v660_v33 }
 0x4d5   :  { %741 = vst.msk [vmem:[%s1152_s6 + $0x10] sm:$0xff] %vm679_vm1, %v718_v34 }
 0x4d6   :  { %682 = vst.msk [vmem:[%s1152_s6 + $0x8] sm:$0x3] %vm681_vm2, %v678_v35  ;;  %v700_v37 = vpop.trf.xlu0 }
 0x4d7   :  { %v719_v38 = vadd.f32 %v740_v36, %v700_v37 }
 0x4d9   :  { %742 = vst.msk [vmem:[%s1152_s6 + $0x18] sm:$0x3] %vm681_vm2, %v719_v38 }

</bundles_post_ra>
